<compile_context>
chip_gen: v7x
topology: tpu7x:2x2x1
jax: 0.10.0
libtpu: 0.0.40
codegen_flags: <defaults>
</compile_context>

<pallas_src>
import functools
import numpy as np

import jax
import jax.numpy as jnp
from jax.experimental import pallas as pl
from jax.experimental.pallas import tpu as pltpu

EPS = 1e-5
BF16 = jnp.bfloat16
MB = 1024 * 1024


# --------------------------------------------------------------------------
# generation-aware budgets & tile helpers
# --------------------------------------------------------------------------
_VMEM_CAP = [None]


def _vmem_cap():
    """Per-call scoped-VMEM ceiling: ~96 MiB on 128 MiB-VMEM parts (v2..v6),
       ~44 MiB on v7x (64 MiB per TensorCore) or unknown devices."""
    if _VMEM_CAP[0] is None:
        try:
            kind = jax.devices()[0].device_kind.lower()
        except Exception:
            kind = ""
        big = any(t in kind for t in ("v2", "v3", "v4", "v5", "v6"))
        _VMEM_CAP[0] = 96 * MB if big else 44 * MB
    return _VMEM_CAP[0]


def _largest_div(dim, cap, mult=1):
    """Largest divisor of `dim` that is <= cap and a multiple of `mult`
       (returns `dim` itself when it already fits under cap)."""
    if dim <= cap:
        return dim
    best = 0
    t = mult
    while t <= cap:
        if dim % t == 0:
            best = t
        t += mult
    if best:
        return best
    if mult > 1:
        return _largest_div(dim, cap, 1)
    return dim


# --------------------------------------------------------------------------
# fused matmul (+ BN scale/shift + bias + activation) kernels
# --------------------------------------------------------------------------
def _mm_single_kernel(x_ref, w_ref, s_ref, b_ref, o_ref, *, act):
    """Single-K-tile fast path: dot -> epilogue -> store (no scratch, no pl.when)."""
    y = jnp.dot(x_ref[...], w_ref[...], preferred_element_type=jnp.float32)
    y = y * s_ref[...] + b_ref[...]
    if act == "relu":
        y = jnp.maximum(y, 0.0)
    elif act == "sigmoid":
        y = jax.nn.sigmoid(y)
    o_ref[...] = y.astype(o_ref.dtype)


def _mm_acc_kernel(x_ref, w_ref, s_ref, b_ref, o_ref, acc_ref, *, act):
    """K-tiled matmul with f32 accumulator and fused epilogue on the last K step."""
    k = pl.program_id(2)

    @pl.when(k == 0)
    def _():
        acc_ref[...] = jnp.zeros_like(acc_ref)

    acc_ref[...] += jnp.dot(x_ref[...], w_ref[...],
                            preferred_element_type=jnp.float32)

    @pl.when(k == pl.num_programs(2) - 1)
    def _():
        y = acc_ref[...] * s_ref[...] + b_ref[...]
        if act == "relu":
            y = jnp.maximum(y, 0.0)
        elif act == "sigmoid":
            y = jax.nn.sigmoid(y)
        o_ref[...] = y.astype(o_ref.dtype)


def matmul_affine(x, w, scale, shift, act="none", out_dtype=BF16):
    """y = act((x @ w) * scale + shift); x:(M,K), w:(K,N), scale/shift:(N,)."""
    M, K = x.shape
    N = w.shape[1]
    cap = _vmem_cap()

    # lane-dense stores for tiny class counts only; 64-channel outputs are stored
    # directly (masked vst) instead of the old pad-to-128 + host-slice round trip.
    n_out = N
    if N < 64:
        n_out = 128
        w = jnp.pad(w, ((0, 0), (0, n_out - N)))
        scale = jnp.pad(scale, (0, n_out - N))
        shift = jnp.pad(shift, (0, n_out - N))

    # ---- tile selection (generation aware) ----
    tn = n_out if n_out <= 1024 else _largest_div(n_out, 1024, 128)
    wb_cap = cap // 3                      # budget for the double-buffered W block
    if 4 * K * tn <= wb_cap:
        tk = K
    else:
        tk = _largest_div(K, max(wb_cap // (4 * tn), 128), 128)
        if tk != K and tk % 128 != 0:      # keep the lane-dim constraint safe
            tk = K
    rem = max(cap - 4 * tk * tn, 2 * MB)
    tm_cap = max(16, min(rem // (4 * tk + 12 * tn), 4096))
    tm = _largest_div(M, tm_cap, 16)
    # v7x-class: make sure at least two blocks land on a parallel axis
    if cap <= 48 * MB and M // tm == 1 and n_out // tn == 1 and M >= 256:
        tm = _largest_div(M, max(tm // 2, 16), 16)

    x = x.astype(BF16)
    w = w.astype(BF16)
    s2 = scale.reshape(1, n_out).astype(jnp.float32)
    b2 = shift.reshape(1, n_out).astype(jnp.float32)

    obytes = jnp.dtype(out_dtype).itemsize
    need = (4 * tm * tk + 4 * tk * tn + 2 * obytes * tm * tn
            + 4 * tm * tn + 16 * tn)
    vlim = int(min(cap, max(32 * MB, need + need // 4)))
    nk = K // tk

    if nk == 1:
        out = pl.pallas_call(
            functools.partial(_mm_single_kernel, act=act),
            out_shape=jax.ShapeDtypeStruct((M, n_out), out_dtype),
            grid_spec=pltpu.PrefetchScalarGridSpec(
                num_scalar_prefetch=0,
                grid=(M // tm, n_out // tn),
                in_specs=[
                    pl.BlockSpec((tm, K), lambda i, j: (i, 0)),
                    pl.BlockSpec((K, tn), lambda i, j: (0, j)),
                    pl.BlockSpec((1, tn), lambda i, j: (0, j)),
                    pl.BlockSpec((1, tn), lambda i, j: (0, j)),
                ],
                out_specs=pl.BlockSpec((tm, tn), lambda i, j: (i, j)),
            ),
            compiler_params=pltpu.CompilerParams(
                dimension_semantics=("parallel", "parallel"),
                vmem_limit_bytes=vlim),
        )(x, w, s2, b2)
    else:
        out = pl.pallas_call(
            functools.partial(_mm_acc_kernel, act=act),
            out_shape=jax.ShapeDtypeStruct((M, n_out), out_dtype),
            grid_spec=pltpu.PrefetchScalarGridSpec(
                num_scalar_prefetch=0,
                grid=(M // tm, n_out // tn, nk),
                in_specs=[
                    pl.BlockSpec((tm, tk), lambda i, j, k: (i, k)),
                    pl.BlockSpec((tk, tn), lambda i, j, k: (k, j)),
                    pl.BlockSpec((1, tn), lambda i, j, k: (0, j)),
                    pl.BlockSpec((1, tn), lambda i, j, k: (0, j)),
                ],
                out_specs=pl.BlockSpec((tm, tn), lambda i, j, k: (i, j)),
                scratch_shapes=[pltpu.VMEM((tm, tn), jnp.float32)],
            ),
            compiler_params=pltpu.CompilerParams(
                dimension_semantics=("parallel", "parallel", "arbitrary"),
                vmem_limit_bytes=vlim),
        )(x, w, s2, b2)

    if n_out != N:
        out = out[:, :N]
    return out


# --------------------------------------------------------------------------
# direct (im2col-free) 3x3 conv kernel
# --------------------------------------------------------------------------
def _conv3x3_kernel(x0_ref, x1_ref, x2_ref, w_ref, s_ref, b_ref, o_ref, *,
                    act, wout):
    """One output image row per grid step: 9 tap-matmuls accumulated in f32,
       BN/bias/activation epilogue fused, bf16 store."""
    tn = o_ref.shape[-1]
    acc = jnp.zeros((wout, tn), jnp.float32)
    for dh, xr in enumerate((x0_ref, x1_ref, x2_ref)):
        xb = xr[...]                                   # (wout+2, cin)
        for dw in range(3):
            acc = acc + jnp.dot(xb[dw:dw + wout, :], w_ref[dh, dw],
                                preferred_element_type=jnp.float32)
    y = acc * s_ref[...] + b_ref[...]
    if act == "relu":
        y = jnp.maximum(y, 0.0)
    o_ref[...] = y.astype(o_ref.dtype)


def _shifted_row_spec(d, wd, cin):
    # the padded input is passed 3x; operand d supplies the dh == d tap row
    return pl.BlockSpec((None, None, wd + 2, cin),
                        lambda b, hh, j: (b, hh + d, 0, 0))


def conv3x3_direct(x, w4, scale, shift, act="relu"):
    """x:(N,H,W,Cin) bf16, w4:(3,3,Cin,Cout) -> (N,H,W,Cout) without im2col."""
    n, h, wd, cin = x.shape
    cout = w4.shape[-1]
    cap = _vmem_cap()

    xp = jnp.pad(x.astype(BF16), ((0, 0), (1, 1), (1, 1), (0, 0)))
    w4 = w4.astype(BF16)

    tn = cout
    while tn > 128 and 9 * cin * tn * 4 > cap // 3:    # double-buffered W block
        tn //= 2
    s2 = scale.reshape(1, cout).astype(jnp.float32)
    b2 = shift.reshape(1, cout).astype(jnp.float32)

    need = (2 * 3 * (wd + 2) * cin * 2 + 2 * 9 * cin * tn * 2
            + 2 * wd * tn * 2 + 4 * wd * tn + 16 * cout)
    vlim = int(min(cap, max(32 * MB, 2 * need)))

    return pl.pallas_call(
        functools.partial(_conv3x3_kernel, act=act, wout=wd),
        out_shape=jax.ShapeDtypeStruct((n, h, wd, cout), BF16),
        grid_spec=pltpu.PrefetchScalarGridSpec(
            num_scalar_prefetch=0,
            grid=(n, h, cout // tn),
            in_specs=[
                _shifted_row_spec(0, wd, cin),
                _shifted_row_spec(1, wd, cin),
                _shifted_row_spec(2, wd, cin),
                pl.BlockSpec((3, 3, cin, tn), lambda b, hh, j: (0, 0, 0, j)),
                pl.BlockSpec((1, tn), lambda b, hh, j: (0, j)),
                pl.BlockSpec((1, tn), lambda b, hh, j: (0, j)),
            ],
            out_specs=pl.BlockSpec((None, None, wd, tn),
                                   lambda b, hh, j: (b, hh, 0, j)),
        ),
        compiler_params=pltpu.CompilerParams(
            dimension_semantics=("parallel", "parallel", "parallel"),
            vmem_limit_bytes=vlim),
    )(xp, xp, xp, w4, s2, b2)


# --------------------------------------------------------------------------
# im2col fallback (used only where the direct path would re-fetch weights
# more bytes than im2col would materialize, i.e. deep/small-spatial layers)
# --------------------------------------------------------------------------
def im2col3x3(x):
    """x: (N,H,W,C) -> (N*H*W, 9*C), tap order (dh, dw, c), pad=1."""
    n, h, w, c = x.shape
    xp = jnp.pad(x, ((0, 0), (1, 1), (1, 1), (0, 0)))
    cols = [xp[:, dh:dh + h, dw:dw + w, :] for dh in range(3) for dw in range(3)]
    return jnp.concatenate(cols, axis=-1).reshape(n * h * w, 9 * c)


def conv3x3(x, p, act="relu"):
    """Conv3x3(+folded BN, bias)+act; picks the direct or matmul path per layer."""
    n, h, wd, cin = x.shape
    w4 = p["w"]                                        # (3, 3, cin, cout)
    cout = w4.shape[-1]
    # direct path wins when the 9x im2col write+read would exceed the per-row
    # weight re-fetch cost:  36*W*Cin > 18*Cin*Cout + 4*W*Cin  <=>  16*W > 9*Cout
    if 9 * cout < 16 * wd:
        return conv3x3_direct(x, w4, p["s"], p["b"], act)
    y = matmul_affine(im2col3x3(x), w4.reshape(9 * cin, cout), p["s"], p["b"], act)
    return y.reshape(n, h, wd, cout)


def double_conv_apply(x, p):
    """Conv3x3+BN+ReLU twice (DoubleConv / conv_block)."""
    y = conv3x3(x, p["c1"], "relu")
    return conv3x3(y, p["c2"], "relu")


# --------------------------------------------------------------------------
# 2x2 max-pool kernel
# --------------------------------------------------------------------------
def _maxpool_kernel(x_ref, o_ref, *, c):
    x = x_ref[...]                                     # (th, 2, wo, 2c)
    hm = jnp.maximum(x[:, 0], x[:, 1])                 # H-pool, pure VPU
    o_ref[...] = jnp.maximum(hm[..., :c], hm[..., c:])  # W-pool via lane slices


def _pick_pool_rows(ho, wo, c, dbytes, budget):
    per_row = 2 * wo * 2 * c * dbytes
    cap = max(1, budget // max(per_row, 1))
    if ho <= cap:
        return ho
    for t in (1024, 512, 256, 128, 64, 32, 16, 8, 4, 2, 1):
        if t <= cap and ho % t == 0:
            return t
    return 1


def maxpool2x2(x):
    """x: (N,H,W,C) -> (N,H/2,W/2,C), tiled over (batch, output-row blocks)."""
    n, h, w, c = x.shape
    ho, wo = h // 2, w // 2
    cap = _vmem_cap()
    budget = 16 * MB if cap > 48 * MB else 8 * MB
    xr = x.reshape(n, ho, 2, wo, 2 * c)                # free contiguous reshape
    th = _pick_pool_rows(ho, wo, c, x.dtype.itemsize, budget)
    need = 2 * (th * 2 * wo * 2 * c + th * wo * c) * x.dtype.itemsize
    vlim = int(min(cap, max(32 * MB, 2 * need)))
    return pl.pallas_call(
        functools.partial(_maxpool_kernel, c=c),
        out_shape=jax.ShapeDtypeStruct((n, ho, wo, c), x.dtype),
        grid_spec=pltpu.PrefetchScalarGridSpec(
            num_scalar_prefetch=0,
            grid=(n, ho // th),
            in_specs=[pl.BlockSpec((None, th, 2, wo, 2 * c),
                                   lambda b, i: (b, i, 0, 0, 0))],
            out_specs=pl.BlockSpec((None, th, wo, c),
                                   lambda b, i: (b, i, 0, 0)),
        ),
        compiler_params=pltpu.CompilerParams(
            dimension_semantics=("parallel", "parallel"),
            vmem_limit_bytes=vlim),
    )(xr)


# --------------------------------------------------------------------------
# fused Attention_block kernel
# --------------------------------------------------------------------------
def _att_kernel(g_ref, x_ref, wg_ref, wx_ref, sg_ref, sx_ref, b_ref,
                wp_ref, bp_ref, o_ref):
    """Two 1x1 convs (+BN), relu, psi conv (+BN) + sigmoid, gating multiply."""
    g1 = jnp.dot(g_ref[...], wg_ref[...],
                 preferred_element_type=jnp.float32) * sg_ref[...]
    x1 = jnp.dot(x_ref[...], wx_ref[...],
                 preferred_element_type=jnp.float32) * sx_ref[...]
    p = jnp.maximum(g1 + x1 + b_ref[...], 0.0)
    psi = jnp.sum(p * wp_ref[...], axis=-1, keepdims=True) + bp_ref[...]
    psi = jax.nn.sigmoid(psi)
    o_ref[...] = (x_ref[...].astype(jnp.float32) * psi).astype(o_ref.dtype)


def attention_apply(g, x, p):
    n, h, w, cg = g.shape
    cl = x.shape[-1]
    fi = p["wg"].shape[1]
    m = n * h * w
    cap = _vmem_cap()

    # size the row block from a ~8 MiB streaming budget (not a flat 512 cap)
    per_row = 4 * (cg + cl) + 4 * cl
    tm_cap = max(16, min((8 * MB) // per_row, 4096))
    tm = _largest_div(m, tm_cap, 16)
    need = 4 * tm * (cg + 2 * cl) + 4 * (cg + cl) * fi + 64 * fi
    vlim = int(min(cap, max(32 * MB, 2 * need)))

    bcast = lambda i: (0, 0)
    out = pl.pallas_call(
        _att_kernel,
        out_shape=jax.ShapeDtypeStruct((m, cl), BF16),
        grid_spec=pltpu.PrefetchScalarGridSpec(
            num_scalar_prefetch=0,
            grid=(m // tm,),
            in_specs=[
                pl.BlockSpec((tm, cg), lambda i: (i, 0)),
                pl.BlockSpec((tm, cl), lambda i: (i, 0)),
                pl.BlockSpec((cg, fi), bcast),
                pl.BlockSpec((cl, fi), bcast),
                pl.BlockSpec((1, fi), bcast),
                pl.BlockSpec((1, fi), bcast),
                pl.BlockSpec((1, fi), bcast),
                pl.BlockSpec((1, fi), bcast),
                pl.BlockSpec((1, 1), bcast),
            ],
            out_specs=pl.BlockSpec((tm, cl), lambda i: (i, 0)),
        ),
        compiler_params=pltpu.CompilerParams(
            dimension_semantics=("parallel",),
            vmem_limit_bytes=vlim),
    )(g.reshape(m, cg).astype(BF16), x.reshape(m, cl).astype(BF16),
      p["wg"], p["wx"], p["sg"], p["sx"], p["b"], p["wp"], p["bp"])
    return out.reshape(n, h, w, cl)


# --------------------------------------------------------------------------
# decoder glue
# --------------------------------------------------------------------------
def up_apply(x1, x2, p):
    """Up (bilinear=False): ConvTranspose2d(k=2,s=2) on x1, cat [x2, x1], DoubleConv."""
    n, h, w, c = x1.shape
    ct_out = p["wt"].shape[1] // 4
    y = matmul_affine(x1.reshape(n * h * w, c), p["wt"], p["st"], p["bt"], "none")
    # TODO(synk): fuse the 2x2 pixel-shuffle and the channel concat below into the
    # surrounding Pallas kernels (split-K accumulation) to remove two HBM passes.
    y = y.reshape(n, h, w, 2, 2, ct_out).transpose(0, 1, 3, 2, 4, 5)
    y = y.reshape(n, 2 * h, 2 * w, ct_out)
    return double_conv_apply(jnp.concatenate([x2, y], axis=-1), p["dc"])


# --------------------------------------------------------------------------
# deterministic parameter construction
# --------------------------------------------------------------------------
class KeyGen:
    def __init__(self, seed):
        self.key = jax.random.PRNGKey(seed)

    def __call__(self):
        self.key, sub = jax.random.split(self.key)
        return sub


def _bn_scale_shift(kg, c):
    gamma = 1.0 + 0.1 * jax.random.normal(kg(), (c,), jnp.float32)
    beta = 0.1 * jax.random.normal(kg(), (c,), jnp.float32)
    mean = 0.1 * jax.random.normal(kg(), (c,), jnp.float32)
    var = 1.0 + 0.1 * jax.random.uniform(kg(), (c,), jnp.float32)
    scale = gamma / jnp.sqrt(var + EPS)
    shift = beta - mean * scale
    return scale, shift


def conv_bn_params(kg, ksize, cin, cout):
    fan_in = ksize * ksize * cin
    w = jax.random.normal(kg(), (ksize, ksize, cin, cout), jnp.float32)
    w = w * (1.0 / np.sqrt(fan_in))
    b = 0.01 * jax.random.normal(kg(), (cout,), jnp.float32)
    s, sh = _bn_scale_shift(kg, cout)
    # conv-bias + BN folded: y = (x (*) W) * s + (b*s + shift_bn)
    return dict(w=w.astype(BF16), s=s, b=sh + b * s)


def double_conv_params(kg, cin, cout):
    return dict(c1=conv_bn_params(kg, 3, cin, cout),
                c2=conv_bn_params(kg, 3, cout, cout))


def up_params(kg, cin, cout):
    ct_out = cin // 2
    wt = jax.random.normal(kg(), (cin, 2, 2, ct_out), jnp.float32) * (1.0 / np.sqrt(cin))
    bt = 0.01 * jax.random.normal(kg(), (ct_out,), jnp.float32)
    return dict(wt=wt.reshape(cin, 4 * ct_out).astype(BF16),
                st=jnp.ones((4 * ct_out,), jnp.float32),
                bt=jnp.tile(bt, 4),
                dc=double_conv_params(kg, cin, cout))


def att_params(kg, fg, fl, fi):
    pg = conv_bn_params(kg, 1, fg, fi)
    px = conv_bn_params(kg, 1, fl, fi)
    pp = conv_bn_params(kg, 1, fi, 1)
    return dict(
        wg=pg["w"].reshape(fg, fi), sg=pg["s"].reshape(1, fi).astype(jnp.float32),
        wx=px["w"].reshape(fl, fi), sx=px["s"].reshape(1, fi).astype(jnp.float32),
        b=(pg["b"] + px["b"]).reshape(1, fi).astype(jnp.float32),
        wp=(pp["w"].astype(jnp.float32).reshape(fi) * pp["s"][0]).reshape(1, fi),
        bp=pp["b"].reshape(1, 1).astype(jnp.float32),
    )


def init_params(seed, n_channels, n_classes):
    kg = KeyGen(seed)
    p = {}
    p["inc"] = double_conv_params(kg, n_channels, 64)
    p["down1"] = double_conv_params(kg, 64, 128)
    p["down2"] = double_conv_params(kg, 128, 256)
    p["down3"] = double_conv_params(kg, 256, 512)
    p["down4"] = double_conv_params(kg, 512, 1024)       # factor = 1 (bilinear=False)
    p["up1"] = up_params(kg, 1024, 512)
    p["att1"] = att_params(kg, 512, 512, 256)
    p["upc1"] = double_conv_params(kg, 1024, 512)
    p["up2"] = up_params(kg, 512, 256)
    p["att2"] = att_params(kg, 256, 256, 128)
    p["upc2"] = double_conv_params(kg, 512, 256)
    p["up3"] = up_params(kg, 256, 128)
    p["att3"] = att_params(kg, 128, 128, 64)
    p["upc3"] = double_conv_params(kg, 256, 128)
    p["up4"] = up_params(kg, 128, 64)
    p["att4"] = att_params(kg, 64, 64, 32)
    p["upc4"] = double_conv_params(kg, 128, 64)
    wo = jax.random.normal(kg(), (64, n_classes), jnp.float32) * (1.0 / np.sqrt(64))
    bo = 0.01 * jax.random.normal(kg(), (n_classes,), jnp.float32)
    p["outc"] = dict(w=wo.astype(BF16), s=jnp.ones((n_classes,), jnp.float32), b=bo)
    return p


# --------------------------------------------------------------------------
# full forward pass
# --------------------------------------------------------------------------
def att_unet_forward(params, x_nchw):
    x = jnp.transpose(x_nchw, (0, 2, 3, 1)).astype(BF16)         # NCHW -> NHWC

    x1 = double_conv_apply(x, params["inc"])
    x2 = double_conv_apply(maxpool2x2(x1), params["down1"])
    x3 = double_conv_apply(maxpool2x2(x2), params["down2"])
    x4 = double_conv_apply(maxpool2x2(x3), params["down3"])
    x5 = double_conv_apply(maxpool2x2(x4), params["down4"])

    d5 = up_apply(x5, x4, params["up1"])
    x4a = attention_apply(d5, x4, params["att1"])
    d5 = double_conv_apply(jnp.concatenate([x4a, d5], axis=-1), params["upc1"])

    d4 = up_apply(d5, x3, params["up2"])
    x3a = attention_apply(d4, x3, params["att2"])
    d4 = double_conv_apply(jnp.concatenate([x3a, d4], axis=-1), params["upc2"])

    d3 = up_apply(d4, x2, params["up3"])
    x2a = attention_apply(d3, x2, params["att3"])
    d3 = double_conv_apply(jnp.concatenate([x2a, d3], axis=-1), params["upc3"])

    d2 = up_apply(d3, x1, params["up4"])
    x1a = attention_apply(d2, x1, params["att4"])
    d2 = double_conv_apply(jnp.concatenate([x1a, d2], axis=-1), params["upc4"])

    # TODO(synk): fuse outc (64 -> n_classes, 1x1) into the epilogue of upc4's
    # second conv so d2 is never written back to HBM.
    n, h, w, c = d2.shape
    logits = matmul_affine(d2.reshape(n * h * w, c), params["outc"]["w"],
                           params["outc"]["s"], params["outc"]["b"], "none",
                           out_dtype=jnp.float32)
    logits = logits.reshape(n, h, w, -1)
    return jnp.transpose(logits, (0, 3, 1, 2))                   # NHWC -> NCHW


# --------------------------------------------------------------------------
if __name__ == "__main__":
    n_channels, n_classes = 3, 2
    key = jax.random.PRNGKey(0)
    x = jax.random.normal(key, (2, n_channels, 16, 16), jnp.float32)

    params = init_params(0, n_channels, n_classes)

    # quick cross-check: direct (im2col-free) conv path vs the matmul path
    kg = KeyGen(123)
    pc = conv_bn_params(kg, 3, 16, 32)
    xc = jax.random.normal(jax.random.PRNGKey(7), (1, 6, 32, 16),
                           jnp.float32).astype(BF16)
    y_dir = conv3x3_direct(xc, pc["w"], pc["s"], pc["b"], "relu")
    y_ref = matmul_affine(im2col3x3(xc), pc["w"].reshape(9 * 16, 32),
                          pc["s"], pc["b"], "relu").reshape(1, 6, 32, 32)
    assert bool(jnp.allclose(y_dir.astype(jnp.float32), y_ref.astype(jnp.float32),
                             atol=5e-2, rtol=5e-2))

    out = att_unet_forward(params, x)
    out = jax.block_until_ready(out)

    assert out.shape == (2, n_classes, 16, 16), out.shape
    assert bool(jnp.all(jnp.isfinite(out)))
    print("KERNEL_OK")
</pallas_src>

<mosaic_0001>
module attributes {stable_mosaic.version = 11 : i64} {
  func.func @_conv3x3_kernel(%arg0: i32, %arg1: i32, %arg2: i32, %arg3: memref<1x1x34x16xbf16, #tpu.memory_space<vmem>>, %arg4: memref<1x1x34x16xbf16, #tpu.memory_space<vmem>>, %arg5: memref<1x1x34x16xbf16, #tpu.memory_space<vmem>>, %arg6: memref<3x3x16x32xbf16, #tpu.memory_space<vmem>>, %arg7: memref<1x32xf32, #tpu.memory_space<vmem>>, %arg8: memref<1x32xf32, #tpu.memory_space<vmem>>, %arg9: memref<1x1x32x32xbf16, #tpu.memory_space<vmem>>) attributes {dimension_semantics = [#tpu.dimension_semantics<parallel>, #tpu.dimension_semantics<parallel>, #tpu.dimension_semantics<parallel>], iteration_bounds = array<i64: 1, 6, 1>, scalar_prefetch = 0 : i64, scratch_operands = 0 : i64, tpu.core_type = #tpu.core_type<tc>, window_params = [{transform_indices = @transform_0, window_bounds = array<i64: 1, 1, 34, 16>}, {transform_indices = @transform_1, window_bounds = array<i64: 1, 1, 34, 16>}, {transform_indices = @transform_2, window_bounds = array<i64: 1, 1, 34, 16>}, {transform_indices = @transform_3, window_bounds = array<i64: 3, 3, 16, 32>}, {transform_indices = @transform_4, window_bounds = array<i64: 1, 32>}, {transform_indices = @transform_5, window_bounds = array<i64: 1, 32>}, {transform_indices = @transform_6, window_bounds = array<i64: 1, 1, 32, 32>}]} {
    %cst = arith.constant 0.000000e+00 : f32
    %0 = vector.broadcast %cst : f32 to vector<32x32xf32>
    %c0 = arith.constant 0 : index
    %c0_0 = arith.constant 0 : index
    %c0_1 = arith.constant 0 : index
    %c0_2 = arith.constant 0 : index
    %1 = vector.load %arg3[%c0, %c0_0, %c0_1, %c0_2] : memref<1x1x34x16xbf16, #tpu.memory_space<vmem>>, vector<1x1x34x16xbf16>
    %2 = vector.shape_cast %1 : vector<1x1x34x16xbf16> to vector<34x16xbf16>
    %3 = vector.extract_strided_slice %2 {offsets = [0, 0], sizes = [32, 16], strides = [1, 1]} : vector<34x16xbf16> to vector<32x16xbf16>
    %c0_3 = arith.constant 0 : index
    %c0_4 = arith.constant 0 : index
    %c0_5 = arith.constant 0 : index
    %c0_6 = arith.constant 0 : index
    %4 = vector.load %arg6[%c0_3, %c0_4, %c0_5, %c0_6] : memref<3x3x16x32xbf16, #tpu.memory_space<vmem>>, vector<1x1x16x32xbf16>
    %5 = vector.shape_cast %4 : vector<1x1x16x32xbf16> to vector<16x32xbf16>
    %cst_7 = arith.constant dense<0.000000e+00> : vector<32x32xf32>
    %6 = tpu.matmul %3, %5, %cst_7 {dimension_numbers = #tpu.dot_dimension_numbers<[1], [0], [0], [1], [0, 0, 1, 1], [], []>} : vector<32x16xbf16>, vector<16x32xbf16>, vector<32x32xf32> -> vector<32x32xf32>
    %7 = arith.addf %0, %6 : vector<32x32xf32>
    %8 = vector.extract_strided_slice %2 {offsets = [1, 0], sizes = [32, 16], strides = [1, 1]} : vector<34x16xbf16> to vector<32x16xbf16>
    %c0_8 = arith.constant 0 : index
    %c1 = arith.constant 1 : index
    %c0_9 = arith.constant 0 : index
    %c0_10 = arith.constant 0 : index
    %9 = vector.load %arg6[%c0_8, %c1, %c0_9, %c0_10] : memref<3x3x16x32xbf16, #tpu.memory_space<vmem>>, vector<1x1x16x32xbf16>
    %10 = vector.shape_cast %9 : vector<1x1x16x32xbf16> to vector<16x32xbf16>
    %cst_11 = arith.constant dense<0.000000e+00> : vector<32x32xf32>
    %11 = tpu.matmul %8, %10, %cst_11 {dimension_numbers = #tpu.dot_dimension_numbers<[1], [0], [0], [1], [0, 0, 1, 1], [], []>} : vector<32x16xbf16>, vector<16x32xbf16>, vector<32x32xf32> -> vector<32x32xf32>
    %12 = arith.addf %7, %11 : vector<32x32xf32>
    %13 = vector.extract_strided_slice %2 {offsets = [2, 0], sizes = [32, 16], strides = [1, 1]} : vector<34x16xbf16> to vector<32x16xbf16>
    %c0_12 = arith.constant 0 : index
    %c2 = arith.constant 2 : index
    %c0_13 = arith.constant 0 : index
    %c0_14 = arith.constant 0 : index
    %14 = vector.load %arg6[%c0_12, %c2, %c0_13, %c0_14] : memref<3x3x16x32xbf16, #tpu.memory_space<vmem>>, vector<1x1x16x32xbf16>
    %15 = vector.shape_cast %14 : vector<1x1x16x32xbf16> to vector<16x32xbf16>
    %cst_15 = arith.constant dense<0.000000e+00> : vector<32x32xf32>
    %16 = tpu.matmul %13, %15, %cst_15 {dimension_numbers = #tpu.dot_dimension_numbers<[1], [0], [0], [1], [0, 0, 1, 1], [], []>} : vector<32x16xbf16>, vector<16x32xbf16>, vector<32x32xf32> -> vector<32x32xf32>
    %17 = arith.addf %12, %16 : vector<32x32xf32>
    %c0_16 = arith.constant 0 : index
    %c0_17 = arith.constant 0 : index
    %c0_18 = arith.constant 0 : index
    %c0_19 = arith.constant 0 : index
    %18 = vector.load %arg4[%c0_16, %c0_17, %c0_18, %c0_19] : memref<1x1x34x16xbf16, #tpu.memory_space<vmem>>, vector<1x1x34x16xbf16>
    %19 = vector.shape_cast %18 : vector<1x1x34x16xbf16> to vector<34x16xbf16>
    %20 = vector.extract_strided_slice %19 {offsets = [0, 0], sizes = [32, 16], strides = [1, 1]} : vector<34x16xbf16> to vector<32x16xbf16>
    %c1_20 = arith.constant 1 : index
    %c0_21 = arith.constant 0 : index
    %c0_22 = arith.constant 0 : index
    %c0_23 = arith.constant 0 : index
    %21 = vector.load %arg6[%c1_20, %c0_21, %c0_22, %c0_23] : memref<3x3x16x32xbf16, #tpu.memory_space<vmem>>, vector<1x1x16x32xbf16>
    %22 = vector.shape_cast %21 : vector<1x1x16x32xbf16> to vector<16x32xbf16>
    %cst_24 = arith.constant dense<0.000000e+00> : vector<32x32xf32>
    %23 = tpu.matmul %20, %22, %cst_24 {dimension_numbers = #tpu.dot_dimension_numbers<[1], [0], [0], [1], [0, 0, 1, 1], [], []>} : vector<32x16xbf16>, vector<16x32xbf16>, vector<32x32xf32> -> vector<32x32xf32>
    %24 = arith.addf %17, %23 : vector<32x32xf32>
    %25 = vector.extract_strided_slice %19 {offsets = [1, 0], sizes = [32, 16], strides = [1, 1]} : vector<34x16xbf16> to vector<32x16xbf16>
    %c1_25 = arith.constant 1 : index
    %c1_26 = arith.constant 1 : index
    %c0_27 = arith.constant 0 : index
    %c0_28 = arith.constant 0 : index
    %26 = vector.load %arg6[%c1_25, %c1_26, %c0_27, %c0_28] : memref<3x3x16x32xbf16, #tpu.memory_space<vmem>>, vector<1x1x16x32xbf16>
    %27 = vector.shape_cast %26 : vector<1x1x16x32xbf16> to vector<16x32xbf16>
    %cst_29 = arith.constant dense<0.000000e+00> : vector<32x32xf32>
    %28 = tpu.matmul %25, %27, %cst_29 {dimension_numbers = #tpu.dot_dimension_numbers<[1], [0], [0], [1], [0, 0, 1, 1], [], []>} : vector<32x16xbf16>, vector<16x32xbf16>, vector<32x32xf32> -> vector<32x32xf32>
    %29 = arith.addf %24, %28 : vector<32x32xf32>
    %30 = vector.extract_strided_slice %19 {offsets = [2, 0], sizes = [32, 16], strides = [1, 1]} : vector<34x16xbf16> to vector<32x16xbf16>
    %c1_30 = arith.constant 1 : index
    %c2_31 = arith.constant 2 : index
    %c0_32 = arith.constant 0 : index
    %c0_33 = arith.constant 0 : index
    %31 = vector.load %arg6[%c1_30, %c2_31, %c0_32, %c0_33] : memref<3x3x16x32xbf16, #tpu.memory_space<vmem>>, vector<1x1x16x32xbf16>
    %32 = vector.shape_cast %31 : vector<1x1x16x32xbf16> to vector<16x32xbf16>
    %cst_34 = arith.constant dense<0.000000e+00> : vector<32x32xf32>
    %33 = tpu.matmul %30, %32, %cst_34 {dimension_numbers = #tpu.dot_dimension_numbers<[1], [0], [0], [1], [0, 0, 1, 1], [], []>} : vector<32x16xbf16>, vector<16x32xbf16>, vector<32x32xf32> -> vector<32x32xf32>
    %34 = arith.addf %29, %33 : vector<32x32xf32>
    %c0_35 = arith.constant 0 : index
    %c0_36 = arith.constant 0 : index
    %c0_37 = arith.constant 0 : index
    %c0_38 = arith.constant 0 : index
    %35 = vector.load %arg5[%c0_35, %c0_36, %c0_37, %c0_38] : memref<1x1x34x16xbf16, #tpu.memory_space<vmem>>, vector<1x1x34x16xbf16>
    %36 = vector.shape_cast %35 : vector<1x1x34x16xbf16> to vector<34x16xbf16>
    %37 = vector.extract_strided_slice %36 {offsets = [0, 0], sizes = [32, 16], strides = [1, 1]} : vector<34x16xbf16> to vector<32x16xbf16>
    %c2_39 = arith.constant 2 : index
    %c0_40 = arith.constant 0 : index
    %c0_41 = arith.constant 0 : index
    %c0_42 = arith.constant 0 : index
    %38 = vector.load %arg6[%c2_39, %c0_40, %c0_41, %c0_42] : memref<3x3x16x32xbf16, #tpu.memory_space<vmem>>, vector<1x1x16x32xbf16>
    %39 = vector.shape_cast %38 : vector<1x1x16x32xbf16> to vector<16x32xbf16>
    %cst_43 = arith.constant dense<0.000000e+00> : vector<32x32xf32>
    %40 = tpu.matmul %37, %39, %cst_43 {dimension_numbers = #tpu.dot_dimension_numbers<[1], [0], [0], [1], [0, 0, 1, 1], [], []>} : vector<32x16xbf16>, vector<16x32xbf16>, vector<32x32xf32> -> vector<32x32xf32>
    %41 = arith.addf %34, %40 : vector<32x32xf32>
    %42 = vector.extract_strided_slice %36 {offsets = [1, 0], sizes = [32, 16], strides = [1, 1]} : vector<34x16xbf16> to vector<32x16xbf16>
    %c2_44 = arith.constant 2 : index
    %c1_45 = arith.constant 1 : index
    %c0_46 = arith.constant 0 : index
    %c0_47 = arith.constant 0 : index
    %43 = vector.load %arg6[%c2_44, %c1_45, %c0_46, %c0_47] : memref<3x3x16x32xbf16, #tpu.memory_space<vmem>>, vector<1x1x16x32xbf16>
    %44 = vector.shape_cast %43 : vector<1x1x16x32xbf16> to vector<16x32xbf16>
    %cst_48 = arith.constant dense<0.000000e+00> : vector<32x32xf32>
    %45 = tpu.matmul %42, %44, %cst_48 {dimension_numbers = #tpu.dot_dimension_numbers<[1], [0], [0], [1], [0, 0, 1, 1], [], []>} : vector<32x16xbf16>, vector<16x32xbf16>, vector<32x32xf32> -> vector<32x32xf32>
    %46 = arith.addf %41, %45 : vector<32x32xf32>
    %47 = vector.extract_strided_slice %36 {offsets = [2, 0], sizes = [32, 16], strides = [1, 1]} : vector<34x16xbf16> to vector<32x16xbf16>
    %c2_49 = arith.constant 2 : index
    %c2_50 = arith.constant 2 : index
    %c0_51 = arith.constant 0 : index
    %c0_52 = arith.constant 0 : index
    %48 = vector.load %arg6[%c2_49, %c2_50, %c0_51, %c0_52] : memref<3x3x16x32xbf16, #tpu.memory_space<vmem>>, vector<1x1x16x32xbf16>
    %49 = vector.shape_cast %48 : vector<1x1x16x32xbf16> to vector<16x32xbf16>
    %cst_53 = arith.constant dense<0.000000e+00> : vector<32x32xf32>
    %50 = tpu.matmul %47, %49, %cst_53 {dimension_numbers = #tpu.dot_dimension_numbers<[1], [0], [0], [1], [0, 0, 1, 1], [], []>} : vector<32x16xbf16>, vector<16x32xbf16>, vector<32x32xf32> -> vector<32x32xf32>
    %51 = arith.addf %46, %50 : vector<32x32xf32>
    %c0_54 = arith.constant 0 : index
    %c0_55 = arith.constant 0 : index
    %52 = vector.load %arg7[%c0_54, %c0_55] : memref<1x32xf32, #tpu.memory_space<vmem>>, vector<1x32xf32>
    %53 = vector.broadcast %52 : vector<1x32xf32> to vector<32x32xf32>
    %54 = arith.mulf %51, %53 : vector<32x32xf32>
    %c0_56 = arith.constant 0 : index
    %c0_57 = arith.constant 0 : index
    %55 = vector.load %arg8[%c0_56, %c0_57] : memref<1x32xf32, #tpu.memory_space<vmem>>, vector<1x32xf32>
    %56 = vector.broadcast %55 : vector<1x32xf32> to vector<32x32xf32>
    %57 = arith.addf %54, %56 : vector<32x32xf32>
    %cst_58 = arith.constant 0.000000e+00 : f32
    %58 = vector.broadcast %cst_58 : f32 to vector<32x32xf32>
    %59 = arith.maximumf %57, %58 : vector<32x32xf32>
    %60 = arith.truncf %59 : vector<32x32xf32> to vector<32x32xbf16>
    %c0_59 = arith.constant 0 : index
    %c0_60 = arith.constant 0 : index
    %c0_61 = arith.constant 0 : index
    %c0_62 = arith.constant 0 : index
    %61 = vector.load %arg9[%c0_59, %c0_60, %c0_61, %c0_62] : memref<1x1x32x32xbf16, #tpu.memory_space<vmem>>, vector<1x1x32x32xbf16>
    %62 = vector.shape_cast %61 : vector<1x1x32x32xbf16> to vector<32x32xbf16>
    %63 = vector.shape_cast %60 : vector<32x32xbf16> to vector<1x1x32x32xbf16>
    tpu.vector_store %arg9[%c0_59, %c0_60, %c0_61, %c0_62], %63 {strides = array<i32>} : memref<1x1x32x32xbf16, #tpu.memory_space<vmem>>, vector<1x1x32x32xbf16>,
    return
  }
  func.func @transform_0(%arg0: i32, %arg1: i32, %arg2: i32) -> (i32, i32, i32, i32) {
    %c0_i32 = arith.constant 0 : i32
    %0 = arith.addi %arg1, %c0_i32 : i32
    %c0_i32_0 = arith.constant 0 : i32
    %c0_i32_1 = arith.constant 0 : i32
    %c0_i32_2 = arith.constant 0 : i32
    return %arg0, %0, %c0_i32_0, %c0_i32_1 : i32, i32, i32, i32
  }
  func.func @transform_1(%arg0: i32, %arg1: i32, %arg2: i32) -> (i32, i32, i32, i32) {
    %c1_i32 = arith.constant 1 : i32
    %0 = arith.addi %arg1, %c1_i32 : i32
    %c0_i32 = arith.constant 0 : i32
    %c0_i32_0 = arith.constant 0 : i32
    %c0_i32_1 = arith.constant 0 : i32
    return %arg0, %0, %c0_i32, %c0_i32_0 : i32, i32, i32, i32
  }
  func.func @transform_2(%arg0: i32, %arg1: i32, %arg2: i32) -> (i32, i32, i32, i32) {
    %c2_i32 = arith.constant 2 : i32
    %0 = arith.addi %arg1, %c2_i32 : i32
    %c0_i32 = arith.constant 0 : i32
    %c0_i32_0 = arith.constant 0 : i32
    %c0_i32_1 = arith.constant 0 : i32
    return %arg0, %0, %c0_i32, %c0_i32_0 : i32, i32, i32, i32
  }
  func.func @transform_3(%arg0: i32, %arg1: i32, %arg2: i32) -> (i32, i32, i32, i32) {
    %c0_i32 = arith.constant 0 : i32
    %c0_i32_0 = arith.constant 0 : i32
    %c0_i32_1 = arith.constant 0 : i32
    %c0_i32_2 = arith.constant 0 : i32
    return %c0_i32, %c0_i32_0, %c0_i32_1, %arg2 : i32, i32, i32, i32
  }
  func.func @transform_4(%arg0: i32, %arg1: i32, %arg2: i32) -> (i32, i32) {
    %c0_i32 = arith.constant 0 : i32
    %c0_i32_0 = arith.constant 0 : i32
    return %c0_i32, %arg2 : i32, i32
  }
  func.func @transform_5(%arg0: i32, %arg1: i32, %arg2: i32) -> (i32, i32) {
    %c0_i32 = arith.constant 0 : i32
    %c0_i32_0 = arith.constant 0 : i32
    return %c0_i32, %arg2 : i32, i32
  }
  func.func @transform_6(%arg0: i32, %arg1: i32, %arg2: i32) -> (i32, i32, i32, i32) {
    %c0_i32 = arith.constant 0 : i32
    %c0_i32_0 = arith.constant 0 : i32
    return %arg0, %arg1, %c0_i32, %arg2 : i32, i32, i32, i32
  }
}

</mosaic_0001>

<bundles_post_ra>
// kernel: tpu_custom_call.1
= control target key start
LH: loop header
LB: loop body
LE: loop exit
PB: predicated region body
PF: predicated region fallthrough
CT: control target
= control target key end

     0   :  { %11 = vsyncpa [#allocation3], 0  ;;  %s1989_s0 = inlined_call_operand.vmem [shape: bf16[1,8,34,16], index: 0, kind: input, shape index: {}]   ;;  %s1990_s1 = inlined_call_operand.vmem [shape: bf16[1,8,34,16], index: 1, kind: input, shape index: {}]   ;;  %s1991_s2 = inlined_call_operand.vmem [shape: bf16[1,8,34,16], index: 2, kind: input, shape index: {}]   ;;  %s1992_s3 = inlined_call_operand.vmem [shape: bf16[3,3,16,32], index: 3, kind: input, shape index: {}]   ;;  %s1993_s4 = inlined_call_operand.vmem [shape: f32[1,32], index: 4, kind: input, shape index: {}]   ;;  %s1994_s5 = inlined_call_operand.vmem [shape: f32[1,32], index: 5, kind: input, shape index: {}]   ;;  %s1995_s6 = inlined_call_operand.hbm [shape: bf16[1,6,32,32], index: 6, kind: output, shape index: {}]  }
   0x1   :  { %13 = vsyncpa [#allocation3 + $0x1], 0  ;;  %s1764_s21 = smov 0   ;;  %s1766_s22 = smov 0  }
   0x2   :  { %s1768_s23 = smov 0   ;;  %s1770_s24 = smov 0  }
   0x3   :  { %s1772_s25 = smov 0   ;;  %s1774_s26 = smov 0  }
   0x4 LB: > { %s1375_s27 = sadd.s32 4294967295, %s1724_s26   ;;  %s1376_s28 = sadd.s32 4294967294, %s1724_s26   ;;  %s1724_s26 = sphi %s1774_s26, %s19_s26   ;;  %s1720_s25 = sphi %s1772_s25, %s2002_s25   ;;  %s1716_s24 = sphi %s1770_s24, %s2001_s24   ;;  %s1712_s23 = sphi %s1768_s23, %s2000_s23   ;;  %s1708_s22 = sphi %s1766_s22, %s1999_s22   ;;  %s1704_s21 = sphi %s1764_s21, %s1998_s21  }
   0x5   : > { %s34_s29 = sadd.s32 1, %s1720_s25  ;;  %s215_s30 = sadd.s32 1, %s1712_s23 }
   0x6   : > { %p36_p0 = scmp.ge.s32.totalorder %s34_s29, 6  ;;  %p225_p1 = scmp.ne.s32.totalorder %s1712_s23, %s1708_s22 }
   0x7   : > { %p226_p2 = scmp.eq.s32.totalorder %s1375_s27, 5  ;;  %p231_p3 = scmp.ne.s32.totalorder %s1708_s22, %s1704_s21 }
   0x8   : > { %s2004_s29 = smov (%p36_p0, %s34_s29), 0  ;;  %p232_p5 = scmp.eq.s32.totalorder %s1376_s28, 5 }
   0x9   : > { %p1804_p4 = por %p226_p2, %p225_p1  ;;  %s209_s8 = ssub.s32 %s1720_s25, %s2004_s29 }
   0xa   : > { %p1382_p6 = scmp.ge.s32.totalorder %s1724_s26, 1  ;;  %p213_p7 = scmp.eq.s32.totalorder %s209_s8, 0 }
   0xb   : > { %p1811_p8 = por %p232_p5, %p231_p3  ;;  %p309_p9 = scmp.lt.s32.totalorder %s1724_s26, 7 }
   0xc   : > { %s1817_s10 = scalar_select %p213_p7, %s1712_s23, %s215_s30  }
   0xd   : > { %p310_p10 = pnand %p1382_p6, %p309_p9 }
   0xe   : > { %v1628_v0 = vld [vmem:[%s1992_s3 + $0x8] sm:$0xff] (!%p310_p10)   ;;  %p375_p11 = scmp.lt.s32.totalorder (!%p310_p10), %s1716_s24, 7  ;;  %v1629_v1 = vld [vmem:[%s1992_s3 + $0x20] sm:$0xff] (!%p310_p10)   ;;  %s382_s18 = sadd.s32 (!%p310_p10), 1, %s1716_s24  ;;  %vm438_vm0 = vsmask.f32 (!%p310_p10), 7424 }
   0xf   : > { %313 = sbr.rel (%p310_p10) target bundleno = 326 (0x146), region = 44  ;;  %1482 = vmatprep.subr.bf16.mxu1 (!%p310_p10), %v1628_v0  ;;  %v1830_v2 = vld [vmem:[%s1992_s3 + $0x28] sm:$0xff] (!%p310_p10)   ;;  %1506 = vmatprep.subr.bf16.mxu0 (!%p310_p10), %v1629_v1  ;;  %v1637_v3 = vld [vmem:[%s1992_s3] sm:$0xff] (!%p310_p10)   ;;  %p385_p12 = scmp.lt.s32.totalorder (!%p310_p10), %s382_s18, 7  ;;  %vm465_vm1 = vcmask (!%p310_p10), 130048   ;;  %v1639_v27 = vld [vmem:[%s1992_s3 + $0x10] sm:$0xff] (!%p310_p10)  }
  0x10   : > { %1483 = vmatpush3.bf16.msra.mxu1 (!%p310_p10), %v1628_v0  ;;  %1507 = vmatpush3.bf16.msra.mxu0 (!%p310_p10), %v1629_v1  ;;  %s393_s11 = sadd.s32 (!%p310_p10), 2, %s1716_s24  ;;  %vm583_vm2 = vcmask (!%p310_p10), 1046528   ;;  %v1638_v37 = vld [vmem:[%s1992_s3 + $0x30] sm:$0xff] (!%p310_p10)   ;;  %v1643_v43 = vld [vmem:[%s1992_s3 + $0x18] sm:$0xff] (!%p310_p10)   ;;  %v1644_v58 = vld [vmem:[%s1992_s3 + $0x40] sm:$0xff] (!%p310_p10)   ;;  %vm1186_vm3 = vcmask (!%p310_p10), 257024  }
  0x11   : > { %1512 = vmatprep.subr.bf16.mxu0 (!%p310_p10), %v1830_v2  ;;  %1488 = vmatprep.subr.bf16.mxu1 (!%p310_p10), %v1637_v3  ;;  %p396_p13 = scmp.lt.s32.totalorder (!%p310_p10), %s393_s11, 7  ;;  %v1641_v46 = vld [vmem:[%s1992_s3 + $0x38] sm:$0xff] (!%p310_p10)   ;;  %s1454_s28 = sshll.u32 (!%p310_p10), %s1716_s24, 8 }
  0x12   : > { %s1934_s13 = scalar_lea.hbm (!%p310_p10), %s1995_s6, %s1454_s28 }
  0x16   : > { %s376_s15 = scalar_select %p375_p11, %s1716_s24, 7 }
  0x17   : > { %s2006_s18 = smov (!%p385_p12, %s382_s18), 7  ;;  %s2008_s11 = smov (!%p396_p13, %s393_s11), 7 }
  0x18   : > { %s1568_s27 = smul.u32 20, %s376_s15 }
  0x19   : > { %s1569_s12 = smul.u32 20, %s2006_s18  ;;  %s370_s18 = sand.u32 1, %s1708_s22  }
  0x1a   : > { %s381_s8 = scalar_lea.vmem %s1989_s0, %s1568_s27  ;;  %s1570_s16 = smul.u32 20, %s2008_s11 }
  0x1b   : > { %v1630_v4 = vld [vmem:[%s381_s8] sm:$0xff]   ;;  %v1841_v5 = vld [vmem:[%s381_s8 + $0x8] sm:$0xff]   ;;  %v1843_v6 = vld [vmem:[%s381_s8 + $0x10] ss:$0 sps:$4 sm:$0x11]   ;;  %s391_s15 = scalar_lea.vmem %s1990_s1, %s1569_s12  ;;  %s1943_s24 = scalar_lea.sflag [#allocation3], %s370_s18 }
  0x1c   : > { %v440_v7 = vshrl.u32 %v1630_v4, 16  ;;  %v442_v8 = vshll.u32 %v1630_v4, 16  ;;  %v447_v9 = vshll.u32 %v1841_v5, 16  ;;  %v451_v10 = vshrl.u32 %v1841_v5, 16  ;;  %v1851_v15 = vld [vmem:[%s391_s15] sm:$0xff]   ;;  %v1853_v18 = vld [vmem:[%s391_s15 + $0x8] sm:$0xff]   ;;  %s1868_s27 = scalar_lea.vmem %s1991_s2, %s1570_s16 }
  0x1d   : > { %v455_v11 = vshll.u32 %v1843_v6, 16  ;;  %v743_v19 = vshrl.u32 %v1851_v15, 16  ;;  %v745_v20 = vshll.u32 %v1851_v15, 16  ;;  %v829_v21 = vrot.slane %v1851_v15, 1  ;;  %v1640_v44 = vld [vmem:[%s1868_s27] sm:$0xff]   ;;  %v1642_v49 = vld [vmem:[%s1868_s27 + $0x8] sm:$0xff]  }
  0x1e   : > { %v444_v12 = vrot.slane %v442_v8, 1  ;;  %v449_v13 = vrot.slane %v447_v9, 1  ;;  %v749_v24 = vshll.u32 %v1853_v18, 16  ;;  %v753_v25 = vshrl.u32 %v1853_v18, 16 }
  0x1f   : > { %v457_v14 = vrot.slane %v455_v11, 1  ;;  %v1636_v26 = vld [vmem:[%s391_s15 + $0x10] ss:$0 sps:$4 sm:$0x11]   ;;  %v747_v28 = vrot.slane %v745_v20, 1  ;;  %v830_v29 = vrot.slane %v1853_v18, 1 }
  0x20   : > { %v445_v16 = vor.u32 %v444_v12, %v440_v7  ;;  %v453_v17 = vor.u32 %v451_v10, %v449_v13  ;;  %v751_v30 = vrot.slane %v749_v24, 1  ;;  %v757_v31 = vshll.u32 %v1636_v26, 16  ;;  %v1645_v56 = vld [vmem:[%s1868_s27 + $0x10] ss:$0 sps:$4 sm:$0x11]   ;;  %s1383_s27 = sshll.u32 %s370_s18, 4 }
  0x21   : > { %v748_v32 = vor.u32 %v747_v28, %v743_v19  ;;  %v831_v36 = vsel %vm583_vm2, %v829_v21, %v830_v29  ;;  %v584_v39 = vrot.slane %v1630_v4, 1  ;;  %v585_v40 = vrot.slane %v1841_v5, 1  ;;  %v1439_v10 = vld [vmem:[%s1993_s4] ss:$0 sm:$0xff]  ;;  %s372_s30 = scalar_lea.vmem [#allocation2], %s1383_s27  ;;  %s1726_s15 = smov [#allocation2]  }
  0x22   : > { %v450_v22 = vsel %vm438_vm0, %v445_v16, %v449_v13  ;;  %v458_v23 = vsel %vm438_vm0, %v453_v17, %v457_v14  ;;  %v755_v33 = vor.u32 %v753_v25, %v751_v30  ;;  %v759_v34 = vrot.slane %v757_v31, 1  ;;  %v1440_v13 = vld [vmem:[%s1994_s5] ss:$0 sm:$0xff]  ;;  %s1208_s8 = sshll.u32 %s372_s30, 4  ;;  %s1650_s16 = sshll.u32 %s1726_s15, 4  ;;  %s1936_s8 = int_to_ptr.vmem [resolvable:$true] %s1208_s8  ;;  %s1651_s16 = int_to_ptr.vmem [resolvable:$false] %s1650_s16 }
  0x23   : > { %1484 = vmatprep.mubr.msk.bf16.mxu1 %vm465_vm1, %v450_v22  ;;  %v752_v35 = vsel %vm438_vm0, %v748_v32, %v751_v30  ;;  %v832_v41 = vrot.slane %v1636_v26, 1  ;;  %v586_v42 = vsel %vm583_vm2, %v584_v39, %v585_v40  ;;  %v990_v47 = vshll.u32 %v1640_v44, 16  ;;  %s1646_s14 = scalar_lea.vmem %s1936_s8, 256  ;;  %s1652_s17 = scalar_lea.vmem %s1651_s16, 512 }
  0x24   : > { %1485 = vmatmul.mubr.msk.bf16.vlgmr.msra.gmra.mrb[0].mxu1 %vm465_vm1, %v458_v23  ;;  %1508 = vmatprep.mubr.msk.bf16.mxu0 %vm465_vm1, %v752_v35  ;;  %v760_v38 = vsel %vm438_vm0, %v755_v33, %v759_v34  ;;  %v587_v48 = vrot.slane %v1843_v6, 1  ;;  %v988_v50 = vshrl.u32 %v1640_v44, 16  ;;  %v994_v52 = vshll.u32 %v1642_v49, 16  ;;  %p1647_p0 = scmp.ne.s32.totalorder %s1936_s8, %s1646_s14  ;;  %p1653_p3 = scmp.lt.s32.totalorder %s1936_s8, %s1651_s16 }
  0x25   : > { %1489 = vmatpush3.bf16.msra.mxu1 %v1637_v3  ;;  %1490 = vmatprep.mubr.msk.bf16.mxu1 %vm465_vm1, %v1630_v4  ;;  %v833_v45 = vsel %vm583_vm2, %v830_v29, %v832_v41  ;;  %v992_v51 = vrot.slane %v990_v47, 1  ;;  %v998_v59 = vshrl.u32 %v1642_v49, 16  ;;  %v1002_v60 = vshll.u32 %v1645_v56, 16  ;;  %p1654_p5 = scmp.lt.s32.totalorder %s1652_s17, %s1646_s14 }
  0x26   : > { %1494 = vmatprep.subr.bf16.mxu1 %v1639_v27  ;;  %1509 = vmatmul.mubr.msk.bf16.vlgmr.msra.gmra.mrb[0].mxu0 %vm465_vm1, %v760_v38  ;;  %v588_v53 = vsel %vm583_vm2, %v585_v40, %v587_v48  ;;  %v996_v55 = vrot.slane %v994_v52, 1  ;;  %v1074_v63 = vrot.slane %v1640_v44, 1  ;;  %v1075_v0 = vrot.slane %v1642_v49, 1  ;;  %p1648_p1 = pnand %p1647_p0, %p1804_p4 }
  0x27   : > { %1513 = vmatpush3.bf16.msra.mxu0 %v1830_v2  ;;  %1514 = vmatprep.mubr.msk.bf16.mxu0 %vm465_vm1, %v831_v36  ;;  %v993_v54 = vor.u32 %v992_v51, %v988_v50  ;;  %v1004_v62 = vrot.slane %v1002_v60, 1  ;;  %v1077_v3 = vrot.slane %v1645_v56, 1  ;;  %p1655_p6 = por %p1654_p5, %p1653_p3 }
  0x28   : > { %1518 = vmatprep.subr.bf16.mxu0 %v1638_v37  ;;  %v1000_v61 = vor.u32 %v998_v59, %v996_v55  ;;  %v1076_v2 = vsel %vm583_vm2, %v1074_v63, %v1075_v0  ;;  %p1649_p2 = pneg %p1648_p1 }
  0x29   : > { %v997_v57 = vsel %vm438_vm0, %v993_v54, %v996_v55  ;;  %v1078_v4 = vsel %vm583_vm2, %v1075_v0, %v1077_v3 }
  0x2a   : > { %v1005_v1 = vsel %vm438_vm0, %v1000_v61, %v1004_v62  ;;  %p1656_p7 = pnand %p1655_p6, %p1649_p2 }
  0x30   : > { %1491 = vmatmul.mubr.msk.bf16.vlgmr.msra.gmra.mrb[0].mxu1 %vm465_vm1, %v1841_v5 }
  0x31   : > { %1495 = vmatpush3.bf16.msra.mxu1 %v1639_v27  ;;  %1496 = vmatprep.mubr.msk.bf16.mxu1 %vm465_vm1, %v586_v42 }
  0x32   : > { %1500 = vmatprep.subr.bf16.mxu1 %v1643_v43  ;;  %1515 = vmatmul.mubr.msk.bf16.vlgmr.msra.gmra.mrb[0].mxu0 %vm465_vm1, %v833_v45 }
  0x33   : > { %1519 = vmatpush3.bf16.msra.mxu0 %v1638_v37  ;;  %1520 = vmatprep.mubr.msk.bf16.mxu0 %vm465_vm1, %v1640_v44 }
  0x34   : > { %1524 = vmatprep.subr.bf16.mxu0 %v1641_v46 }
  0x3c   : > { %1497 = vmatmul.mubr.msk.bf16.vlgmr.msra.gmra.mrb[0].mxu1 %vm465_vm1, %v588_v53 }
  0x3d   : > { %1501 = vmatpush3.bf16.msra.mxu1 %v1643_v43  ;;  %1502 = vmatprep.mubr.msk.bf16.mxu1 %vm465_vm1, %v1851_v15 }
  0x3e   : > { %1521 = vmatmul.mubr.msk.bf16.vlgmr.msra.gmra.mrb[0].mxu0 %vm465_vm1, %v1642_v49 }
  0x3f   : > { %1525 = vmatpush3.bf16.msra.mxu0 %v1641_v46  ;;  %1526 = vmatprep.mubr.msk.bf16.mxu0 %vm465_vm1, %v997_v57 }
  0x40   : > { %1530 = vmatprep.subr.bf16.mxu0 %v1644_v58 }
  0x48   : > { %1503 = vmatmul.mubr.msk.bf16.vlgmr.msra.gmra.mrb[0].mxu1 %vm465_vm1, %v1853_v18 }
  0x4a   : > { %1527 = vmatmul.mubr.msk.bf16.vlgmr.msra.gmra.mrb[0].mxu0 %vm465_vm1, %v1005_v1 }
  0x4b   : > { %1531 = vmatpush3.bf16.msra.mxu0 %v1644_v58  ;;  %1532 = vmatprep.mubr.msk.bf16.mxu0 %vm465_vm1, %v1076_v2 }
  0x56   : > { %1533 = vmatmul.mubr.msk.bf16.vlgmr.msra.gmra.mrb[0].mxu0 %vm465_vm1, %v1078_v4 }
 0x11b   : > { %v1504_v5 = vpop.f32.mrb[0].mxu1 }
 0x11c   : > { %v718_v6 = vpop.f32.mrb[1].mxu1 }
 0x11d   : > { %v1505_v7 = vpop.f32.mrb[2].mxu1 }
 0x11e   : > { %v721_v8 = vpop.f32.mrb[3].mxu1 }
 0x129   : > { %v1534_v9 = vpop.f32.mrb[0].mxu0 }
 0x12a   : > { %v1536_v11 = vadd.f32 %v1534_v9, %v1504_v5  ;;  %v1125_v12 = vpop.f32.mrb[1].mxu0 }
 0x12b   : > { %v1537_v14 = vadd.f32 %v1125_v12, %v718_v6  ;;  %v1535_v15 = vpop.f32.mrb[2].mxu0 }
 0x12c   : > { %v1153_v16 = vmul.f32 %v1536_v11, %v1439_v10  ;;  %v1538_v17 = vadd.f32 %v1535_v15, %v1505_v7  ;;  %v1128_v18 = vpop.f32.mrb[3].mxu0 }
 0x12d   : > { %v1151_v19 = vmul.f32 %v1537_v14, %v1439_v10  ;;  %v1539_v20 = vadd.f32 %v1128_v18, %v721_v8 }
 0x12e   : > { %v1164_v21 = vadd.f32 %v1440_v13, %v1153_v16  ;;  %v1154_v22 = vmul.f32 %v1538_v17, %v1439_v10 }
 0x12f   : > { %v1162_v23 = vadd.f32 %v1440_v13, %v1151_v19  ;;  %v1152_v24 = vmul.f32 %v1539_v20, %v1439_v10 }
 0x130   : > { %v1168_v25 = vmax.f32 %v1164_v21, 0.0  ;;  %v1165_v26 = vadd.f32 %v1440_v13, %v1154_v22 }
 0x131   : > { %v1166_v27 = vmax.f32 %v1162_v23, 0.0  ;;  %v1163_v28 = vadd.f32 %v1440_v13, %v1152_v24 }
 0x132   : > { %v1452_v29 = vpack.c.bf16 %v1168_v25, %v1168_v25  ;;  %v1169_v30 = vmax.f32 %v1165_v26, 0.0 }
 0x133   : > { %v1450_v31 = vpack.c.bf16 %v1166_v27, %v1166_v27  ;;  %v1167_v32 = vmax.f32 %v1163_v28, 0.0 }
 0x134   : > { %1189 = vst.msk [vmem:[%s372_s30 + $0x8] sm:$0xf] %vm1186_vm3, %v1452_v29  ;;  %v1453_v33 = vpack.c.bf16 %v1169_v30, %v1169_v30 }
 0x135   : > { %1187 = vst.msk [vmem:[%s372_s30] sm:$0xf] %vm1186_vm3, %v1450_v31  ;;  %v1451_v34 = vpack.c.bf16 %v1167_v32, %v1167_v32 }
 0x136   : > { %1190 = vst.msk [vmem:[%s372_s30 + $0xc] sm:$0xf] %vm1186_vm3, %v1453_v33 }
 0x137   : > { %1188 = vst.msk [vmem:[%s372_s30 + $0x4] sm:$0xf] %vm1186_vm3, %v1451_v34 }
 0x138   : > { %1659 = shalt.err (!%p1656_p7)
}
 0x139   : > { %s1660_s18 = scalar_lea.hbm %s1934_s13, 256  ;;  %s1664_s27 = scalar_lea.hbm %s1995_s6, 1536 }
 0x13a   : > { %p1661_p9 = scmp.ne.s32.totalorder %s1934_s13, %s1660_s18  ;;  %p1665_p12 = scmp.lt.u32.totalorder %s1934_s13, %s1995_s6 }
 0x13b   : > { %p1666_p13 = scmp.lt.u32.totalorder %s1664_s27, %s1660_s18  ;;  %p1668_p1 = scmp.lt.u32.totalorder %s1660_s18, %s1934_s13 }
 0x13c   : > { %p1662_p10 = pnand %p1661_p9, %p1804_p4 }
 0x13d   : > { %p1667_p0 = por %p1666_p13, %p1665_p12 }
 0x13e   : > { %p1663_p11 = pneg %p1662_p10 }
 0x13f   : > { %p1669_p2 = por %p1668_p1, %p1667_p0 }
 0x141   : > { %p1670_p3 = pnand %p1669_p2, %p1663_p11 }
 0x143   : > { %1673 = shalt.err (!%p1670_p3)
}
 0x144   : > { %s1727_s11 = smov 64   ;;  %s1728_s12 = smov 4  }
 0x145   : > { %1571 = dma.vmem_to_hbm [thread:$0]  (%p1804_p4), %s1936_s8, 256, %s1934_s13, %s1943_s24, %s1727_s11, %s1727_s11, %s1728_s12  }
 0x146 PF: > { %p1577_p5 = scmp.ge.s32.totalorder %s1724_s26, 2  ;;  %s1223_s14 = sand.u32 1, %s1704_s21  }
 0x147   : > { %s1224_s15 = scalar_lea.sflag [#allocation3], %s1223_s14 }
 0x148   : > { %p1574_p6 = pnand %p1577_p5, %p1811_p8 }
 0x14a   : > { %1699 = dma.done.wait (!%p1574_p6), %s1224_s15, 256  }
 0x14b   : > { %1701 = vsyncadd (!%p1574_p6), %s1224_s15, 4294967040  ;;  %s19_s26 = sadd.s32 1, %s1724_s26   ;;  %s1998_s21 = smov %s1708_s22 }
 0x14c   : > { %p16_p7 = scmp.ge.s32.totalorder %s19_s26, 8   ;;  %s1999_s22 = smov %s1712_s23 }
 0x14d   : > { %s2000_s23 = smov %s1817_s10  ;;  %s2001_s24 = smov %s1720_s25 }
 0x14e   : > { %s2002_s25 = smov %s2004_s29  ;;  %18 = sbr.rel (!%p16_p7) target bundleno = 4 (0x4), region = 102 }
 0x155   :  { %1229 = vsyncpa [#allocation3], 1 }
 0x156   :  { %1231 = vsyncpa [#allocation3 + $0x1], 1 }

</bundles_post_ra>
